<compile_context>
chip_gen: v5e
topology: v5e:2x2
jax: 0.10.0
libtpu: 0.0.40
codegen_flags: <defaults>
</compile_context>

<pallas_src>
import functools

import jax
import jax.numpy as jnp
from jax.experimental import pallas as pl
from jax.experimental.pallas import tpu as pltpu


def _frl_kernel(x_ref, m_ref, wpack_ref, pw_ref, o_ref, *, W, C, B_TILE, blockdiag):
    # x_ref    : (R, HWp)   R = B_TILE*C rows (batch-folded channels), spatial on lanes
    # m_ref    : (4, HWp)   f32 boundary masks [col>=1, col<=W-2, row>=1, row<=H-2]
    # wpack_ref: (R, 11)    [ depthwise taps (9, col = ky*3+kx) | dw bias | pw bias ]
    # pw_ref   : (R, R) block-diagonal pointwise weight (tiny C) or (C, C) dense
    # o_ref    : (R, HWp)
    HWp = o_ref.shape[1]

    x = x_ref[...].astype(jnp.float32)               # (R, HWp)
    wpack = wpack_ref[...].astype(jnp.float32)       # (R, 11)
    wdw = wpack[:, 0:9]
    bdw = wpack[:, 9:10]
    bpw = wpack[:, 10:11]

    m = m_ref[...]                                   # (4, HWp)
    m_left, m_right = m[0:1, :], m[1:2, :]
    m_up, m_down = m[2:3, :], m[3:4, :]

    # ---- depthwise 3x3 conv (halo handled by rolls + resident masks) --------
    # Column-masked horizontal neighbours, built once: 2 rolls + 2 mults.
    x_m1 = pltpu.roll(x, shift=1, axis=1) * m_left          # value at (r, c-1)
    x_p1 = pltpu.roll(x, shift=HWp - 1, axis=1) * m_right   # value at (r, c+1)

    def hgroup(ky):                                  # 3 MACs per kernel row
        return (x_m1 * wdw[:, 3 * ky + 0:3 * ky + 1]
                + x * wdw[:, 3 * ky + 1:3 * ky + 2]
                + x_p1 * wdw[:, 3 * ky + 2:3 * ky + 3])

    # Row halo: one roll by +/-W and one row-mask mult per off-centre group.
    acc = hgroup(1)
    acc = acc + pltpu.roll(hgroup(0), shift=W % HWp, axis=1) * m_up
    acc = acc + pltpu.roll(hgroup(2), shift=(HWp - W) % HWp, axis=1) * m_down

    h = acc + bdw
    h = jnp.where(h > 0, h, 0.1 * h)                 # LeakyReLU(0.1)

    # ---- pointwise 1x1 conv on the MXU ---------------------------------------
    pw = pw_ref[...].astype(jnp.float32)
    if blockdiag:
        # Tiny C: single block-diagonal (R,R)@(R,HWp) matmul over all folded batches.
        out = jnp.dot(pw, h, preferred_element_type=jnp.float32) + bpw
        out = jnp.where(out > 0, out, 0.1 * out)     # LeakyReLU(0.1)
        o_ref[...] = out.astype(o_ref.dtype)
    else:
        # C >= 16: full-rank (C,C) matmul per folded batch element.
        for b in range(B_TILE):
            hb = h[b * C:(b + 1) * C, :]
            ob = jnp.dot(pw, hb, preferred_element_type=jnp.float32)
            ob = ob + bpw[b * C:(b + 1) * C, :]
            ob = jnp.where(ob > 0, ob, 0.1 * ob)     # LeakyReLU(0.1)
            o_ref[b * C:(b + 1) * C, :] = ob.astype(o_ref.dtype)


def _choose_b_tile(N, C, HWp, itemsize, vmem_budget):
    """Largest legal batch fold: sublane-full rows, block fits the VMEM budget."""
    def need(d):
        R = d * C
        return 4 * R * HWp * itemsize + (4 * HWp + R * (R + 16)) * 4 + (1 << 20)

    legal = [d for d in range(1, N + 1)
             if N % d == 0 and ((d * C) % 8 == 0 or d == N)]
    fitting = [d for d in legal if d * C <= 1024 and need(d) <= vmem_budget]
    pool = fitting if fitting else legal[:1]

    def score(d):
        R = d * C
        block_bytes = R * HWp * itemsize
        return ((R % 8 == 0),                 # fill all 8 sublanes
                min(block_bytes, 2 << 20),    # amortize ~600-cycle step overhead
                (N // d) >= 2,                # keep >=2 parallel steps (v7x 2 TCs)
                -d)
    return max(pool, key=score)


def feature_refinement_layer(x_nchw, w_dw, b_dw, w_pw, b_pw):
    """x_nchw: (N, C, H, W).  w_dw: (C,1,3,3), b_dw: (C,), w_pw: (C,C,1,1), b_pw: (C,).
    Returns (N, C, H, W)."""
    N, C, H, W = x_nchw.shape
    HW = H * W
    HWp = ((HW + 127) // 128) * 128          # lane-align the spatial axis
    itemsize = jnp.dtype(x_nchw.dtype).itemsize

    try:
        vmem_cap = int(pltpu.get_tpu_info().vmem_capacity_bytes)
    except Exception:
        vmem_cap = 64 * 1024 * 1024          # conservative (v7x-sized) fallback

    B_TILE = _choose_b_tile(N, C, HWp, itemsize, int(vmem_cap * 0.75))
    R = B_TILE * C
    G = N // B_TILE

    # Free, metadata-only reshape (C, H, W contiguous in NCHW); pad lanes if needed.
    x_flat = x_nchw.reshape(N * C, HW)
    if HWp != HW:
        x_flat = jnp.pad(x_flat, ((0, 0), (0, HWp - HW)))

    # Resident boundary masks (f32), computed once in the wrapper.
    idx = jnp.arange(HWp, dtype=jnp.int32)
    row = idx // W
    col = idx % W
    masks = jnp.stack([col >= 1, col <= W - 2, row >= 1, row <= H - 2],
                      axis=0).astype(jnp.float32)            # (4, HWp)

    # Packed resident weights: [dw taps | dw bias | pw bias], tiled per folded batch.
    wdw_flat = w_dw.reshape(C, 9).astype(jnp.float32)         # tap col = ky*3 + kx
    wpack = jnp.concatenate([wdw_flat,
                             b_dw.reshape(C, 1).astype(jnp.float32),
                             b_pw.reshape(C, 1).astype(jnp.float32)], axis=1)
    wpack = jnp.tile(wpack, (B_TILE, 1))                      # (R, 11)

    wpw2d = w_pw[:, :, 0, 0].astype(jnp.float32)              # (C_out, C_in)
    use_blockdiag = C < 16
    if use_blockdiag:
        pw_op = jnp.kron(jnp.eye(B_TILE, dtype=jnp.float32), wpw2d)   # (R, R)
    else:
        pw_op = wpw2d                                                 # (C, C)

    block_bytes = R * HWp * itemsize
    resident_bytes = (4 * HWp + R * 11 + pw_op.size) * 4
    need = 4 * block_bytes + 2 * resident_bytes + (1 << 20)
    vmem_limit = int(min(max(2 * need, 8 << 20), int(vmem_cap * 0.85)))

    k_pw = R if use_blockdiag else C
    cost = pl.CostEstimate(
        flops=int(N * C * HWp * (27 + 2 * k_pw)),
        transcendentals=0,
        bytes_accessed=int(2 * N * C * HWp * itemsize + resident_bytes),
    )

    out_flat = pl.pallas_call(
        functools.partial(_frl_kernel, W=W, C=C, B_TILE=B_TILE,
                          blockdiag=use_blockdiag),
        out_shape=jax.ShapeDtypeStruct((N * C, HWp), x_nchw.dtype),
        grid_spec=pltpu.PrefetchScalarGridSpec(
            num_scalar_prefetch=0,
            grid=(G,),
            in_specs=[
                pl.BlockSpec((R, HWp), lambda i: (i, 0)),          # x tile
                pl.BlockSpec((4, HWp), lambda i: (0, 0)),          # masks (resident)
                pl.BlockSpec((R, 11), lambda i: (0, 0)),           # packed weights
                pl.BlockSpec(pw_op.shape, lambda i: (0, 0)),       # pointwise weight
            ],
            out_specs=pl.BlockSpec((R, HWp), lambda i: (i, 0)),
        ),
        compiler_params=pltpu.CompilerParams(
            dimension_semantics=("parallel",),
            vmem_limit_bytes=vmem_limit,
        ),
        cost_estimate=cost,
    )(x_flat, masks, wpack, pw_op)

    if HWp != HW:
        out_flat = out_flat[:, :HW]
    return out_flat.reshape(N, C, H, W)


def _reference(x_nchw, w_dw, b_dw, w_pw, b_pw):
    """Pure-JAX reference (lax conv), used for a correctness sanity check."""
    y = jax.lax.conv_general_dilated(
        x_nchw, w_dw, window_strides=(1, 1), padding=((1, 1), (1, 1)),
        feature_group_count=x_nchw.shape[1],
        dimension_numbers=("NCHW", "OIHW", "NCHW"))
    y = y + b_dw.reshape(1, -1, 1, 1)
    y = jnp.where(y > 0, y, 0.1 * y)
    z = jax.lax.conv_general_dilated(
        y, w_pw, window_strides=(1, 1), padding=((0, 0), (0, 0)),
        dimension_numbers=("NCHW", "OIHW", "NCHW"))
    z = z + b_pw.reshape(1, -1, 1, 1)
    z = jnp.where(z > 0, z, 0.1 * z)
    return z


if __name__ == "__main__":
    N, C, H, W = 2, 4, 16, 16

    key = jax.random.PRNGKey(0)
    kx, k1, k2, k3, k4 = jax.random.split(key, 5)

    x = jax.random.normal(kx, (N, C, H, W), jnp.float32)
    # Deterministic parameter init (shapes from the module's __init__).
    w_dw = jax.random.normal(k1, (C, 1, 3, 3), jnp.float32) * 0.3   # depthwise
    b_dw = jax.random.normal(k2, (C,), jnp.float32) * 0.1
    w_pw = jax.random.normal(k3, (C, C, 1, 1), jnp.float32) * 0.3   # pointwise
    b_pw = jax.random.normal(k4, (C,), jnp.float32) * 0.1

    out = feature_refinement_layer(x, w_dw, b_dw, w_pw, b_pw)
    out = jax.block_until_ready(out)

    ref = _reference(x, w_dw, b_dw, w_pw, b_pw)
    assert out.shape == (N, C, H, W)
    assert jnp.allclose(out, ref, atol=1e-4, rtol=1e-4), "mismatch vs reference"

    print("KERNEL_OK")
</pallas_src>

<mosaic_0001>
module attributes {stable_mosaic.version = 11 : i64} {
  func.func @_frl_kernel(%arg0: i32, %arg1: memref<8x256xf32, #tpu.memory_space<vmem>>, %arg2: memref<4x256xf32, #tpu.memory_space<vmem>>, %arg3: memref<8x11xf32, #tpu.memory_space<vmem>>, %arg4: memref<8x8xf32, #tpu.memory_space<vmem>>, %arg5: memref<8x256xf32, #tpu.memory_space<vmem>>) attributes {dimension_semantics = [#tpu.dimension_semantics<parallel>], iteration_bounds = array<i64: 1>, scalar_prefetch = 0 : i64, scratch_operands = 0 : i64, tpu.core_type = #tpu.core_type<tc>, window_params = [{transform_indices = @transform_0, window_bounds = array<i64: 8, 256>}, {pipeline_mode = #tpu.pipeline_mode<synchronous>, transform_indices = @transform_1, window_bounds = array<i64: 4, 256>}, {pipeline_mode = #tpu.pipeline_mode<synchronous>, transform_indices = @transform_2, window_bounds = array<i64: 8, 11>}, {pipeline_mode = #tpu.pipeline_mode<synchronous>, transform_indices = @transform_3, window_bounds = array<i64: 8, 8>}, {transform_indices = @transform_4, window_bounds = array<i64: 8, 256>}]} {
    %c0 = arith.constant 0 : index
    %c0_0 = arith.constant 0 : index
    %0 = vector.load %arg1[%c0, %c0_0] : memref<8x256xf32, #tpu.memory_space<vmem>>, vector<8x256xf32>
    %c0_1 = arith.constant 0 : index
    %c0_2 = arith.constant 0 : index
    %1 = vector.load %arg3[%c0_1, %c0_2] : memref<8x11xf32, #tpu.memory_space<vmem>>, vector<8x11xf32>
    %2 = vector.extract_strided_slice %1 {offsets = [0, 0], sizes = [8, 9], strides = [1, 1]} : vector<8x11xf32> to vector<8x9xf32>
    %3 = vector.extract_strided_slice %1 {offsets = [0, 9], sizes = [8, 1], strides = [1, 1]} : vector<8x11xf32> to vector<8x1xf32>
    %4 = vector.extract_strided_slice %1 {offsets = [0, 10], sizes = [8, 1], strides = [1, 1]} : vector<8x11xf32> to vector<8x1xf32>
    %c0_3 = arith.constant 0 : index
    %c0_4 = arith.constant 0 : index
    %5 = vector.load %arg2[%c0_3, %c0_4] : memref<4x256xf32, #tpu.memory_space<vmem>>, vector<4x256xf32>
    %6 = vector.extract_strided_slice %5 {offsets = [0, 0], sizes = [1, 256], strides = [1, 1]} : vector<4x256xf32> to vector<1x256xf32>
    %7 = vector.extract_strided_slice %5 {offsets = [1, 0], sizes = [1, 256], strides = [1, 1]} : vector<4x256xf32> to vector<1x256xf32>
    %8 = vector.extract_strided_slice %5 {offsets = [2, 0], sizes = [1, 256], strides = [1, 1]} : vector<4x256xf32> to vector<1x256xf32>
    %9 = vector.extract_strided_slice %5 {offsets = [3, 0], sizes = [1, 256], strides = [1, 1]} : vector<4x256xf32> to vector<1x256xf32>
    %c1_i32 = arith.constant 1 : i32
    %10 = tpu.dynamic_rotate %0 by %c1_i32 dim 1 : vector<8x256xf32>, i32 -> vector<8x256xf32>
    %11 = vector.broadcast %6 : vector<1x256xf32> to vector<8x256xf32>
    %12 = arith.mulf %10, %11 : vector<8x256xf32>
    %c255_i32 = arith.constant 255 : i32
    %13 = tpu.dynamic_rotate %0 by %c255_i32 dim 1 : vector<8x256xf32>, i32 -> vector<8x256xf32>
    %14 = vector.broadcast %7 : vector<1x256xf32> to vector<8x256xf32>
    %15 = arith.mulf %13, %14 : vector<8x256xf32>
    %16 = vector.extract_strided_slice %2 {offsets = [0, 3], sizes = [8, 1], strides = [1, 1]} : vector<8x9xf32> to vector<8x1xf32>
    %17 = vector.broadcast %16 : vector<8x1xf32> to vector<8x256xf32>
    %18 = arith.mulf %12, %17 : vector<8x256xf32>
    %19 = vector.extract_strided_slice %2 {offsets = [0, 4], sizes = [8, 1], strides = [1, 1]} : vector<8x9xf32> to vector<8x1xf32>
    %20 = vector.broadcast %19 : vector<8x1xf32> to vector<8x256xf32>
    %21 = arith.mulf %0, %20 : vector<8x256xf32>
    %22 = arith.addf %18, %21 : vector<8x256xf32>
    %23 = vector.extract_strided_slice %2 {offsets = [0, 5], sizes = [8, 1], strides = [1, 1]} : vector<8x9xf32> to vector<8x1xf32>
    %24 = vector.broadcast %23 : vector<8x1xf32> to vector<8x256xf32>
    %25 = arith.mulf %15, %24 : vector<8x256xf32>
    %26 = arith.addf %22, %25 : vector<8x256xf32>
    %27 = vector.extract_strided_slice %2 {offsets = [0, 0], sizes = [8, 1], strides = [1, 1]} : vector<8x9xf32> to vector<8x1xf32>
    %28 = vector.broadcast %27 : vector<8x1xf32> to vector<8x256xf32>
    %29 = arith.mulf %12, %28 : vector<8x256xf32>
    %30 = vector.extract_strided_slice %2 {offsets = [0, 1], sizes = [8, 1], strides = [1, 1]} : vector<8x9xf32> to vector<8x1xf32>
    %31 = vector.broadcast %30 : vector<8x1xf32> to vector<8x256xf32>
    %32 = arith.mulf %0, %31 : vector<8x256xf32>
    %33 = arith.addf %29, %32 : vector<8x256xf32>
    %34 = vector.extract_strided_slice %2 {offsets = [0, 2], sizes = [8, 1], strides = [1, 1]} : vector<8x9xf32> to vector<8x1xf32>
    %35 = vector.broadcast %34 : vector<8x1xf32> to vector<8x256xf32>
    %36 = arith.mulf %15, %35 : vector<8x256xf32>
    %37 = arith.addf %33, %36 : vector<8x256xf32>
    %c16_i32 = arith.constant 16 : i32
    %38 = tpu.dynamic_rotate %37 by %c16_i32 dim 1 : vector<8x256xf32>, i32 -> vector<8x256xf32>
    %39 = vector.broadcast %8 : vector<1x256xf32> to vector<8x256xf32>
    %40 = arith.mulf %38, %39 : vector<8x256xf32>
    %41 = arith.addf %26, %40 : vector<8x256xf32>
    %42 = vector.extract_strided_slice %2 {offsets = [0, 6], sizes = [8, 1], strides = [1, 1]} : vector<8x9xf32> to vector<8x1xf32>
    %43 = vector.broadcast %42 : vector<8x1xf32> to vector<8x256xf32>
    %44 = arith.mulf %12, %43 : vector<8x256xf32>
    %45 = vector.extract_strided_slice %2 {offsets = [0, 7], sizes = [8, 1], strides = [1, 1]} : vector<8x9xf32> to vector<8x1xf32>
    %46 = vector.broadcast %45 : vector<8x1xf32> to vector<8x256xf32>
    %47 = arith.mulf %0, %46 : vector<8x256xf32>
    %48 = arith.addf %44, %47 : vector<8x256xf32>
    %49 = vector.extract_strided_slice %2 {offsets = [0, 8], sizes = [8, 1], strides = [1, 1]} : vector<8x9xf32> to vector<8x1xf32>
    %50 = vector.broadcast %49 : vector<8x1xf32> to vector<8x256xf32>
    %51 = arith.mulf %15, %50 : vector<8x256xf32>
    %52 = arith.addf %48, %51 : vector<8x256xf32>
    %c240_i32 = arith.constant 240 : i32
    %53 = tpu.dynamic_rotate %52 by %c240_i32 dim 1 : vector<8x256xf32>, i32 -> vector<8x256xf32>
    %54 = vector.broadcast %9 : vector<1x256xf32> to vector<8x256xf32>
    %55 = arith.mulf %53, %54 : vector<8x256xf32>
    %56 = arith.addf %41, %55 : vector<8x256xf32>
    %57 = vector.broadcast %3 : vector<8x1xf32> to vector<8x256xf32>
    %58 = arith.addf %56, %57 : vector<8x256xf32>
    %cst = arith.constant 0.000000e+00 : f32
    %59 = vector.broadcast %cst : f32 to vector<8x256xf32>
    %60 = arith.cmpf ogt, %58, %59 : vector<8x256xf32>
    %cst_5 = arith.constant 1.000000e-01 : f32
    %61 = vector.broadcast %cst_5 : f32 to vector<8x256xf32>
    %62 = arith.mulf %61, %58 : vector<8x256xf32>
    %63 = arith.select %60, %58, %62 : vector<8x256xi1>, vector<8x256xf32>
    %c0_6 = arith.constant 0 : index
    %c0_7 = arith.constant 0 : index
    %64 = vector.load %arg4[%c0_6, %c0_7] : memref<8x8xf32, #tpu.memory_space<vmem>>, vector<8x8xf32>
    %cst_8 = arith.constant dense<0.000000e+00> : vector<8x256xf32>
    %65 = tpu.matmul %64, %63, %cst_8 {dimension_numbers = #tpu.dot_dimension_numbers<[1], [0], [0], [1], [0, 0, 1, 1], [], []>} : vector<8x8xf32>, vector<8x256xf32>, vector<8x256xf32> -> vector<8x256xf32>
    %66 = vector.broadcast %4 : vector<8x1xf32> to vector<8x256xf32>
    %67 = arith.addf %65, %66 : vector<8x256xf32>
    %cst_9 = arith.constant 0.000000e+00 : f32
    %68 = vector.broadcast %cst_9 : f32 to vector<8x256xf32>
    %69 = arith.cmpf ogt, %67, %68 : vector<8x256xf32>
    %cst_10 = arith.constant 1.000000e-01 : f32
    %70 = vector.broadcast %cst_10 : f32 to vector<8x256xf32>
    %71 = arith.mulf %70, %67 : vector<8x256xf32>
    %72 = arith.select %69, %67, %71 : vector<8x256xi1>, vector<8x256xf32>
    %c0_11 = arith.constant 0 : index
    %c0_12 = arith.constant 0 : index
    %73 = vector.load %arg5[%c0_11, %c0_12] : memref<8x256xf32, #tpu.memory_space<vmem>>, vector<8x256xf32>
    tpu.vector_store %arg5[%c0_11, %c0_12], %72 {strides = array<i32>} : memref<8x256xf32, #tpu.memory_space<vmem>>, vector<8x256xf32>,
    return
  }
  func.func @transform_0(%arg0: i32) -> (i32, i32) {
    %c0_i32 = arith.constant 0 : i32
    %c0_i32_0 = arith.constant 0 : i32
    return %arg0, %c0_i32 : i32, i32
  }
  func.func @transform_1(%arg0: i32) -> (i32, i32) {
    %c0_i32 = arith.constant 0 : i32
    %c0_i32_0 = arith.constant 0 : i32
    %c0_i32_1 = arith.constant 0 : i32
    return %c0_i32, %c0_i32_0 : i32, i32
  }
  func.func @transform_2(%arg0: i32) -> (i32, i32) {
    %c0_i32 = arith.constant 0 : i32
    %c0_i32_0 = arith.constant 0 : i32
    %c0_i32_1 = arith.constant 0 : i32
    return %c0_i32, %c0_i32_0 : i32, i32
  }
  func.func @transform_3(%arg0: i32) -> (i32, i32) {
    %c0_i32 = arith.constant 0 : i32
    %c0_i32_0 = arith.constant 0 : i32
    %c0_i32_1 = arith.constant 0 : i32
    return %c0_i32, %c0_i32_0 : i32, i32
  }
  func.func @transform_4(%arg0: i32) -> (i32, i32) {
    %c0_i32 = arith.constant 0 : i32
    %c0_i32_0 = arith.constant 0 : i32
    return %arg0, %c0_i32 : i32, i32
  }
}

</mosaic_0001>

<bundles_post_ra>
// kernel: tpu_custom_call.1
= control target key start
LH: loop header
LB: loop body
LE: loop exit
PB: predicated region body
PF: predicated region fallthrough
CT: control target
= control target key end

     0   :  { %9 = vsyncpa [#allocation3], 0  ;;  %s564_s0 = inlined_call_operand.hbm [shape: f32[8,256], index: 0, kind: input, shape index: {}]   ;;  %s565_s1 = inlined_call_operand.hbm [shape: f32[4,256], index: 1, kind: input, shape index: {}]   ;;  %s566_s2 = inlined_call_operand.hbm [shape: f32[8,11], index: 2, kind: input, shape index: {}]   ;;  %s567_s3 = inlined_call_operand.hbm [shape: f32[8,8], index: 3, kind: input, shape index: {}]   ;;  %s568_s4 = inlined_call_operand.hbm [shape: f32[8,256], index: 4, kind: output, shape index: {}]  }
   0x1   :  { %10 = vsyncpa [#allocation6], 0 }
   0x2   :  { %11 = vsyncpa [#allocation9], 0  ;;  %s29_s17 = sshll.u32 %s565_s1, 4  ;;  %s30_s17 = int_to_ptr.hbm [resolvable:$true] %s29_s17 }
   0x3   :  { %12 = vsyncpa [#allocation4], 0  ;;  %s461_s18 = smov [#allocation5]   ;;  %s18_s22 = sshll.u32 %s564_s0, 4  ;;  %s19_s22 = int_to_ptr.hbm [resolvable:$true] %s18_s22 }
   0x4   :  { %s31_s19 = sshll.u32 %s461_s18, 4  ;;  %s462_s23 = smov [#allocation2]   ;;  %s32_s19 = int_to_ptr.vmem [resolvable:$true] %s31_s19 }
   0x5   :  { %34 = dma.hbm_to_vmem [thread:$0]  %s30_s17, 128, %s32_s19, [#allocation6]  }
   0x6   :  { %s20_s24 = sshll.u32 %s462_s23, 4  ;;  %s40_s27 = sshll.u32 %s566_s2, 4  ;;  %s21_s24 = int_to_ptr.vmem [resolvable:$true] %s20_s24  ;;  %s41_s27 = int_to_ptr.hbm [resolvable:$true] %s40_s27 }
   0x7   :  { %23 = dma.hbm_to_vmem [thread:$0]  %s19_s22, 256, %s21_s24, [#allocation3]  }
   0x8   :  { %s51_s29 = sshll.u32 %s567_s3, 4  ;;  %s463_s30 = smov [#allocation7]   ;;  %s52_s29 = int_to_ptr.hbm [resolvable:$true] %s51_s29 }
   0x9   :  { %s42_s5 = sshll.u32 %s463_s30, 4  ;;  %s464_s0 = smov [#allocation8]   ;;  %s43_s5 = int_to_ptr.vmem [resolvable:$true] %s42_s5 }
   0xa   :  { %45 = dma.hbm_to_vmem [thread:$0]  %s41_s27, 128, %s43_s5, [#allocation6]  }
   0xb   :  { %s53_s6 = sshll.u32 %s464_s0, 4  ;;  %s54_s6 = int_to_ptr.vmem [resolvable:$true] %s53_s6 }
   0xc   :  { %56 = dma.hbm_to_vmem [thread:$0]  %s52_s29, 128, %s54_s6, [#allocation9]  }
   0xd   :  { %453 = dma.done.wait [#allocation3], 256  }
   0xe   :  { %454 = vsyncadd [#allocation3], 4294967040 }
   0xf   :  { %455 = dma.done.wait [#allocation6], 256  }
  0x10   :  { %456 = vsyncadd [#allocation6], 4294967040 }
  0x11   :  { %457 = dma.done.wait [#allocation9], 128  }
  0x12   :  { %458 = vsyncadd [#allocation9], 4294967168  ;;  %v465_v0 = vmov 0   ;;  %v466_v1 = vmov 6   ;;  %v467_v2 = vmov 2   ;;  %v518_v3 = vld [vmem:[#allocation2] sm:$0xff]  ;;  %v81_v12 = vlaneseq }
  0x13   :  { %321 = vset.pattern.permute.xlu2 %v465_v0  ;;  %324 = vset.pattern.permute.xlu1 %v466_v1  ;;  %v520_v4 = vld [vmem:[#allocation7] sm:$0xff]  ;;  %s468_s2 = smov 127   ;;  %s469_s3 = smov 1   ;;  %v525_v5 = vld [vmem:[#allocation2 + $0x8] sm:$0xff]  ;;  %v470_v6 = vmov 1   ;;  %v471_v7 = vmov 7  }
  0x14   :  { %323 = vset.pattern.permute.xlu0 %v467_v2  ;;  %95 = vrot.lane.b32.xlu1 %v518_v3, %s468_s2  ;;  %v472_v8 = vmov 8   ;;  %v473_v9 = vmov 4   ;;  %v474_v10 = vmov 3   ;;  %v475_v11 = vmov 5   ;;  %v537_v14 = vld [vmem:[#allocation5] sm:$0xff]  ;;  %s477_s7 = smov 16  }
  0x15   :  { %77 = vrot.lane.b32.xlu0 %v518_v3, %s469_s3  ;;  %134 = vperm.xlu2 %321, %v520_v4   ;;  %v476_v15 = vmov 9   ;;  %v539_v18 = vand.u32 127, %v81_v12  ;;  %v87_v19 = vperm.slane %v537_v14, 0  ;;  %v88_v20 = vperm.slane %v537_v14, 4  ;;  %s478_s8 = smov 112   ;;  %s480_s9 = smov [#allocation10]  }
  0x16   :  { %v102_v23 = vperm.slane %v537_v14, 1  ;;  %v103_v24 = vperm.slane %v537_v14, 5  ;;  %vm228_vm6 = vcmask 64512   ;;  %s285_s10 = sshll.u32 %s480_s9, 4  ;;  %s287_s13 = sshll.u32 %s568_s4, 4  ;;  %s286_s10 = int_to_ptr.vmem [resolvable:$true] %s285_s10  ;;  %s288_s13 = int_to_ptr.hbm [resolvable:$true] %s287_s13 }
  0x17   :  { %vm83_vm0 = vcmp.lt.s32.totalorder %v539_v18, 1  ;;  %v91_v21 = vperm.slane %v87_v19, 0  ;;  %v92_v22 = vperm.slane %v88_v20, 0  ;;  %vm99_vm1 = vcmp.lt.s32.totalorder %v539_v18, 127 }
  0x18   :  { %v106_v32 = vperm.slane %v102_v23, 1  ;;  %v107_v33 = vperm.slane %v103_v24, 1  ;;  %vm159_vm2 = vcmp.lt.s32.totalorder %v539_v18, 16  ;;  %vm198_vm3 = vcmp.lt.s32.totalorder %v539_v18, 112 }
  0x1c   :  { %97 = vrot.lane.b32.xlu1 %v525_v5, %s468_s2 }
  0x1d   :  { %79 = vrot.lane.b32.xlu0 %v525_v5, %s469_s3  ;;  %322 = vset.pattern.permute.xlu2 %v470_v6 }
  0x1e   :  { %140 = vperm.xlu2 %322, %v520_v4  }
  0x24   :  { %173 = vperm.xlu1 %324, %v520_v4  }
  0x25   :  { %148 = vperm.xlu0 %323, %v520_v4  }
  0x26   :  { %325 = vset.pattern.permute.xlu2 %v471_v7 }
  0x27   :  { %179 = vperm.xlu2 %325, %v520_v4  }
  0x2c   :  { %326 = vset.pattern.permute.xlu1 %v472_v8 }
  0x2d   :  { %328 = vset.pattern.permute.xlu0 %v473_v9  ;;  %187 = vperm.xlu1 %326, %v520_v4  }
  0x2e   :  { %118 = vperm.xlu0 %328, %v520_v4  }
  0x2f   :  { %327 = vset.pattern.permute.xlu2 %v474_v10 }
  0x30   :  { %112 = vperm.xlu2 %327, %v520_v4  }
  0x35   :  { %329 = vset.pattern.permute.xlu1 %v475_v11 }
  0x36   :  { %126 = vperm.xlu1 %329, %v520_v4  }
  0x3e   :  { %330 = vset.pattern.permute.xlu1 %v476_v15  ;;  %v479_v15 = vmov 10  }
  0x3f   :  { %331 = vset.pattern.permute.xlu2 %v479_v15  ;;  %332 = vset.pattern.permute.xlu0 %v479_v15 }
  0x6f   :  { %v135_v13 = vpop.permute.xlu2 %134 }
  0x78   :  { %v141_v29 = vpop.permute.xlu2 %140 }
  0x79   :  { %v143_v36 = vmul.f32 %v141_v29, %v518_v3  ;;  %v144_v37 = vmul.f32 %v141_v29, %v525_v5 }
  0x81   :  { %v180_v50 = vpop.permute.xlu2 %179 }
  0x82   :  { %v182_v51 = vmul.f32 %v180_v50, %v518_v3  ;;  %v183_v52 = vmul.f32 %v180_v50, %v525_v5 }
  0x86   :  { %v96_v16 = vpop.permute.xlu1 %95 }
  0x87   :  { %v78_v17 = vpop.permute.xlu0 %77 }
  0x8a   :  { %v113_v63 = vpop.permute.xlu2 %112 }
  0x8e   :  { %v98_v25 = vpop.permute.xlu1 %97 }
  0x8f   :  { %v80_v26 = vpop.permute.xlu0 %79  ;;  %v100_v34 = vsel %vm99_vm1, %v96_v16, %v98_v25  ;;  %v101_v35 = vsel %vm99_vm1, %v98_v25, %v96_v16 }
  0x90   :  { %v84_v27 = vsel %vm83_vm0, %v78_v17, %v80_v26  ;;  %v85_v28 = vsel %vm83_vm0, %v80_v26, %v78_v17  ;;  %v108_v40 = vmul.f32 %v106_v32, %v100_v34  ;;  %v109_v41 = vmul.f32 %v107_v33, %v101_v35 }
  0x91   :  { %v93_v30 = vmul.f32 %v91_v21, %v85_v28  ;;  %v94_v31 = vmul.f32 %v92_v22, %v84_v27  ;;  %v162_v17 = vperm.slane %v537_v14, 2  ;;  %v201_v21 = vperm.slane %v537_v14, 3 }
  0x92   :  { %v202_v22 = vperm.slane %v537_v14, 7 }
  0x93   :  { %v137_v38 = vmul.f32 %v135_v13, %v93_v30  ;;  %v138_v39 = vmul.f32 %v135_v13, %v94_v31  ;;  %v115_v2 = vmul.f32 %v113_v63, %v93_v30  ;;  %v116_v6 = vmul.f32 %v113_v63, %v94_v31 }
  0x94   :  { %v166_v19 = vperm.slane %v162_v17, 2  ;;  %v205_v26 = vperm.slane %v201_v21, 3  ;;  %v206_v27 = vperm.slane %v202_v22, 3 }
  0x95   :  { %v146_v44 = vadd.f32 %v144_v37, %v138_v39  ;;  %v145_v45 = vadd.f32 %v143_v36, %v137_v38 }
  0x96   :  { %v174_v42 = vpop.permute.xlu1 %173 }
  0x97   :  { %v149_v43 = vpop.permute.xlu0 %148  ;;  %v176_v53 = vmul.f32 %v174_v42, %v93_v30  ;;  %v177_v54 = vmul.f32 %v174_v42, %v94_v31 }
  0x98   :  { %v151_v46 = vmul.f32 %v149_v43, %v108_v40  ;;  %v152_v47 = vmul.f32 %v149_v43, %v109_v41 }
  0x99   :  { %v184_v56 = vadd.f32 %v182_v51, %v176_v53  ;;  %v185_v57 = vadd.f32 %v183_v52, %v177_v54 }
  0x9a   :  { %v153_v48 = vadd.f32 %v151_v46, %v145_v45  ;;  %v154_v49 = vadd.f32 %v152_v47, %v146_v44 }
  0x9c   :  { %157 = vrot.lane.b32.xlu1 %v154_v49, %s477_s7  ;;  %155 = vrot.lane.b32.xlu2 %v153_v48, %s477_s7 }
  0x9f   :  { %v188_v55 = vpop.permute.xlu1 %187 }
  0xa0   :  { %v190_v58 = vmul.f32 %v188_v55, %v108_v40  ;;  %v191_v59 = vmul.f32 %v188_v55, %v109_v41  ;;  %v119_v62 = vpop.permute.xlu0 %118 }
  0xa1   :  { %v121_v0 = vmul.f32 %v119_v62, %v518_v3  ;;  %v122_v1 = vmul.f32 %v119_v62, %v525_v5  ;;  %v163_v3 = vperm.slane %v537_v14, 6 }
  0xa2   :  { %v192_v60 = vadd.f32 %v190_v58, %v184_v56  ;;  %v193_v61 = vadd.f32 %v191_v59, %v185_v57 }
  0xa3   :  { %v123_v8 = vadd.f32 %v121_v0, %v115_v2  ;;  %v124_v9 = vadd.f32 %v122_v1, %v116_v6  ;;  %v167_v20 = vperm.slane %v163_v3, 2 }
  0xa4   :  { %212 = vperm.xlu1 %330, %v520_v4   ;;  %196 = vrot.lane.b32.xlu0 %v193_v61, %s478_s8 }
  0xa5   :  { %194 = vrot.lane.b32.xlu2 %v192_v60, %s478_s8 }
  0xa8   :  { %v127_v7 = vpop.permute.xlu1 %126 }
  0xa9   :  { %v129_v10 = vmul.f32 %v127_v7, %v108_v40  ;;  %v130_v11 = vmul.f32 %v127_v7, %v109_v41  ;;  %v223_v41 = vld [vmem:[#allocation8] sm:$0xff] }
  0xab   :  { %v131_v12 = vadd.f32 %v129_v10, %v123_v8  ;;  %v132_v13 = vadd.f32 %v130_v11, %v124_v9 }
  0xad   :  { %225 = vperm.xlu2 %331, %v520_v4  }
  0xf6   :  { %v156_v16 = vpop.permute.xlu2 %155 }
  0xff   :  { %v195_v28 = vpop.permute.xlu2 %194 }
 0x107   :  { %v226_v44 = vpop.permute.xlu2 %225 }
 0x10e   :  { %v158_v5 = vpop.permute.xlu1 %157 }
 0x10f   :  { %v160_v23 = vsel %vm159_vm2, %v156_v16, %v158_v5  ;;  %v161_v24 = vsel %vm159_vm2, %v158_v5, %v156_v16 }
 0x110   :  { %v168_v25 = vmul.f32 %v166_v19, %v161_v24  ;;  %v169_v4 = vmul.f32 %v167_v20, %v160_v23 }
 0x112   :  { %v170_v34 = vadd.f32 %v168_v25, %v131_v12  ;;  %v171_v35 = vadd.f32 %v169_v4, %v132_v13 }
 0x116   :  { %v197_v29 = vpop.permute.xlu0 %196  ;;  %v213_v36 = vpop.permute.xlu1 %212 }
 0x117   :  { %v199_v30 = vsel %vm198_vm3, %v195_v28, %v197_v29  ;;  %v200_v31 = vsel %vm198_vm3, %v197_v29, %v195_v28 }
 0x118   :  { %v207_v32 = vmul.f32 %v205_v26, %v199_v30  ;;  %v208_v33 = vmul.f32 %v206_v27, %v200_v31 }
 0x11a   :  { %v209_v37 = vadd.f32 %v207_v32, %v170_v34  ;;  %v210_v38 = vadd.f32 %v208_v33, %v171_v35 }
 0x11c   :  { %v215_v14 = vadd.f32 %v213_v36, %v209_v37  ;;  %v216_v39 = vadd.f32 %v213_v36, %v210_v38 }
 0x11e   :  { %vm217_vm4 = vcmp.gt.f32.partialorder %v215_v14, 0.0  ;;  %v219_v40 = vmul.f32 0.1, %v215_v14  ;;  %vm218_vm5 = vcmp.gt.f32.partialorder %v216_v39, 0.0  ;;  %v220_v18 = vmul.f32 0.1, %v216_v39 }
 0x120   :  { %v221_v42 = vsel %vm217_vm4, %v215_v14, %v219_v40  ;;  %v222_v43 = vsel %vm218_vm5, %v216_v39, %v220_v18 }
 0x121   :  { %247 = vmatpush.msra.mxu0 %v221_v42  ;;  %267 = vmatpush.msra.mxu1 %v222_v43 }
 0x122   :  { %299 = vmatmul.msk.f32.vlgmr.msra.gmra.mxu0 %vm228_vm6, %v223_v41  ;;  %300 = vmatmul.msk.f32.vlgmr.msra.gmra.mxu1 %vm228_vm6, %v223_v41 }
 0x19f   :  { %v249_v45 = vpop.f32.mrf.mxu0  ;;  %v269_v46 = vpop.f32.mrf.mxu1 }
 0x1a0   :  { %v250_v47 = vadd.f32 %v249_v45, %v226_v44  ;;  %v270_v48 = vadd.f32 %v269_v46, %v226_v44 }
 0x1a2   :  { %vm272_vm7 = vcmp.gt.f32.partialorder %v250_v47, 0.0  ;;  %vm273_vm8 = vcmp.gt.f32.partialorder %v270_v48, 0.0  ;;  %v274_v49 = vmul.f32 0.1, %v250_v47  ;;  %v275_v50 = vmul.f32 0.1, %v270_v48 }
 0x1a4   :  { %v276_v51 = vsel %vm272_vm7, %v250_v47, %v274_v49  ;;  %v277_v52 = vsel %vm273_vm8, %v270_v48, %v275_v50 }
 0x1a5   :  { %278 = vst [vmem:[#allocation10] sm:$0xff] %v276_v51 }
 0x1a6   :  { %279 = vst [vmem:[#allocation10 + $0x8] sm:$0xff] %v277_v52 }
 0x1a7   :  { %290 = dma.vmem_to_hbm [thread:$0]  %s286_s10, 256, %s288_s13, [#allocation4]  }
 0x1a8   :  { %459 = dma.done.wait [#allocation4], 256  }
 0x1a9   :  { %460 = vsyncadd [#allocation4], 4294967040 }
 0x1aa   :  { %295 = vsyncpa [#allocation3], 1 }
 0x1ab   :  { %296 = vsyncpa [#allocation6], 1 }
 0x1ac   :  { %297 = vsyncpa [#allocation9], 1 }
 0x1ad   :  { %298 = vsyncpa [#allocation4], 1 }

</bundles_post_ra>
